<compile_context>
chip_gen: v7x
topology: tpu7x:2x2x1
jax: 0.10.0
libtpu: 0.0.40
codegen_flags: <defaults>
</compile_context>

<pallas_src>
import jax
import jax.numpy as jnp
from jax.experimental import pallas as pl
from jax.experimental.pallas import tpu as pltpu


def _scale_predictor_kernel(feat_ref, w_ref, b_ref, out_ref):
    # feat_ref: (TB, nz) VMEM   w_ref: (1, nz) VMEM
    # b_ref:    (1,)     SMEM   (holds bias + 1.0)
    # out_ref:  (1, TB)  VMEM   (lane-dense output tile)
    feat = feat_ref[...]
    w = w_ref[...]
    b_plus_one = b_ref[0]

    # Single-output-unit Linear: VPU broadcast-multiply + XLU lane reduction.
    # Keeps the MXU out of the per-tile path (the kernel is HBM-bound anyway)
    # and avoids a (nz, 1) single-lane weight layout.
    s = jnp.sum(feat * w, axis=-1)                      # (TB,)
    scale = jnp.maximum(s + b_plus_one, 0.0) + 1e-12    # relu(xW + b + 1) + eps
    out_ref[...] = scale.reshape(1, -1).astype(out_ref.dtype)


def scale_predictor(feat, weight, bias, *, block_b=512):
    """feat: (B, nz); weight: (1, nz) [torch Linear layout]; bias: (1,)."""
    B, nz = feat.shape
    feat = feat.astype(jnp.float32)
    w = weight.astype(jnp.float32).reshape(1, nz)            # keep lane-dense
    b_plus_one = bias.astype(jnp.float32).reshape(1) + 1.0   # fold the "+ 1"

    # Tile the batch axis.
    #   small B : one tile rounded up to the sublane quantum (8)
    #   large B : TB = multiple of 128 (lane-dense (1, TB) output blocks stay
    #             aligned), capped so double-buffered feat tiles fit VMEM even
    #             for large nz.
    if B <= block_b:
        tb = max(8, ((B + 7) // 8) * 8)
    else:
        vmem_budget = 8 * 1024 * 1024                       # feat double-buffer
        tb_cap = max(128, (vmem_budget // (2 * 4 * nz)) // 128 * 128)
        tb = min(block_b, tb_cap)
    num_tiles = pl.cdiv(B, tb)
    b_pad = num_tiles * tb
    if b_pad != B:
        feat = jnp.pad(feat, ((0, b_pad - B), (0, 0)))

    out_flat = pl.pallas_call(
        _scale_predictor_kernel,
        out_shape=jax.ShapeDtypeStruct((1, b_pad), jnp.float32),
        grid_spec=pltpu.PrefetchScalarGridSpec(
            num_scalar_prefetch=0,
            grid=(num_tiles,),
            in_specs=[
                pl.BlockSpec((tb, nz), lambda i: (i, 0)),           # feat tile
                pl.BlockSpec((1, nz), lambda i: (0, 0)),            # weight
                pl.BlockSpec(memory_space=pltpu.MemorySpace.SMEM),  # bias + 1
            ],
            out_specs=pl.BlockSpec((1, tb), lambda i: (0, i)),
        ),
        compiler_params=pltpu.CompilerParams(
            dimension_semantics=("parallel",),   # megacore sharding on v7x
        ),
    )(feat, w, b_plus_one)

    out = out_flat.reshape(b_pad, 1)
    if b_pad != B:
        out = out[:B]
    return out


def scale_predictor_ref(feat, weight, bias):
    lin = feat @ weight.T + bias
    return jnp.maximum(lin + 1.0, 0.0) + 1e-12


if __name__ == "__main__":
    key = jax.random.PRNGKey(0)
    k_feat, k_w, k_b = jax.random.split(key, 3)

    B, nz = 8, 32
    feat = jax.random.normal(k_feat, (B, nz), dtype=jnp.float32)

    # Deterministic parameter init (mimics nn.Linear(nz, 1) uniform init).
    bound = 1.0 / (nz ** 0.5)
    weight = jax.random.uniform(k_w, (1, nz), jnp.float32, -bound, bound)
    bias = jax.random.uniform(k_b, (1,), jnp.float32, -bound, bound)

    out = scale_predictor(feat, weight, bias)
    out = jax.block_until_ready(out)

    ref = scale_predictor_ref(feat, weight, bias)
    assert out.shape == (B, 1)
    assert jnp.allclose(out, ref, atol=1e-5, rtol=1e-5)

    # Also exercise the multi-tile / remainder path (padding + parallel grid).
    B2 = 1300
    feat2 = jax.random.normal(key, (B2, nz), dtype=jnp.float32)
    out2 = jax.block_until_ready(scale_predictor(feat2, weight, bias))
    ref2 = scale_predictor_ref(feat2, weight, bias)
    assert out2.shape == (B2, 1)
    assert jnp.allclose(out2, ref2, atol=1e-5, rtol=1e-5)

    print("KERNEL_OK")
</pallas_src>

<mosaic_0001>
module attributes {stable_mosaic.version = 11 : i64} {
  func.func @_scale_predictor_kernel(%arg0: i32, %arg1: memref<8x32xf32, #tpu.memory_space<vmem>>, %arg2: memref<1x32xf32, #tpu.memory_space<vmem>>, %arg3: memref<1xf32, #tpu.memory_space<smem>>, %arg4: memref<1x8xf32, #tpu.memory_space<vmem>>) attributes {dimension_semantics = [#tpu.dimension_semantics<parallel>], iteration_bounds = array<i64: 1>, scalar_prefetch = 0 : i64, scratch_operands = 0 : i64, tpu.core_type = #tpu.core_type<tc>, window_params = [{transform_indices = @transform_0, window_bounds = array<i64: 8, 32>}, {pipeline_mode = #tpu.pipeline_mode<synchronous>, transform_indices = @transform_1, window_bounds = array<i64: 1, 32>}, {transform_indices = @transform_2, window_bounds = array<i64: 1>}, {transform_indices = @transform_3, window_bounds = array<i64: 1, 8>}]} {
    %c0 = arith.constant 0 : index
    %c0_0 = arith.constant 0 : index
    %0 = vector.load %arg1[%c0, %c0_0] : memref<8x32xf32, #tpu.memory_space<vmem>>, vector<8x32xf32>
    %c0_1 = arith.constant 0 : index
    %c0_2 = arith.constant 0 : index
    %1 = vector.load %arg2[%c0_1, %c0_2] : memref<1x32xf32, #tpu.memory_space<vmem>>, vector<1x32xf32>
    %c0_3 = arith.constant 0 : index
    %2 = memref.load %arg3[%c0_3] : memref<1xf32, #tpu.memory_space<smem>>
    %3 = vector.broadcast %1 : vector<1x32xf32> to vector<8x32xf32>
    %4 = arith.mulf %0, %3 : vector<8x32xf32>
    %cst = arith.constant dense<0.000000e+00> : vector<8xf32>
    %5 = vector.multi_reduction <add>, %4, %cst [1] : vector<8x32xf32> to vector<8xf32>
    %6 = vector.broadcast %2 : f32 to vector<8xf32>
    %7 = arith.addf %5, %6 : vector<8xf32>
    %cst_4 = arith.constant 0.000000e+00 : f32
    %8 = vector.broadcast %cst_4 : f32 to vector<8xf32>
    %9 = arith.maximumf %7, %8 : vector<8xf32>
    %cst_5 = arith.constant 9.99999996E-13 : f32
    %10 = vector.broadcast %cst_5 : f32 to vector<8xf32>
    %11 = arith.addf %9, %10 : vector<8xf32>
    %12 = vector.shape_cast %11 : vector<8xf32> to vector<1x8xf32>
    %c0_6 = arith.constant 0 : index
    %c0_7 = arith.constant 0 : index
    %13 = vector.load %arg4[%c0_6, %c0_7] : memref<1x8xf32, #tpu.memory_space<vmem>>, vector<1x8xf32>
    tpu.vector_store %arg4[%c0_6, %c0_7], %12 {strides = array<i32>} : memref<1x8xf32, #tpu.memory_space<vmem>>, vector<1x8xf32>,
    return
  }
  func.func @transform_0(%arg0: i32) -> (i32, i32) {
    %c0_i32 = arith.constant 0 : i32
    %c0_i32_0 = arith.constant 0 : i32
    return %arg0, %c0_i32 : i32, i32
  }
  func.func @transform_1(%arg0: i32) -> (i32, i32) {
    %c0_i32 = arith.constant 0 : i32
    %c0_i32_0 = arith.constant 0 : i32
    %c0_i32_1 = arith.constant 0 : i32
    return %c0_i32, %c0_i32_0 : i32, i32
  }
  func.func @transform_2(%arg0: i32) -> i32 {
    %c0_i32 = arith.constant 0 : i32
    %c0_i32_0 = arith.constant 0 : i32
    return %c0_i32 : i32
  }
  func.func @transform_3(%arg0: i32) -> (i32, i32) {
    %c0_i32 = arith.constant 0 : i32
    %c0_i32_0 = arith.constant 0 : i32
    return %c0_i32, %arg0 : i32, i32
  }
}

</mosaic_0001>

<bundles_post_ra>
// kernel: tpu_custom_call.1
= control target key start
LH: loop header
LB: loop body
LE: loop exit
PB: predicated region body
PF: predicated region fallthrough
CT: control target
= control target key end

     0   :  { %9 = vsyncpa [#allocation4], 0  ;;  %s174_s0 = inlined_call_operand.hbm [shape: f32[8,32], index: 0, kind: input, shape index: {}]   ;;  %s175_s1 = inlined_call_operand.vmem [shape: f32[1,32], index: 1, kind: input, shape index: {}]   ;;  %s176_s2 = inlined_call_operand.<no memory space> [shape: f32[1], index: 2, kind: input, shape index: {}]   ;;  %s177_s3 = inlined_call_operand.hbm [shape: f32[1,8], index: 3, kind: output, shape index: {}]  }
   0x1   :  { %10 = vsyncpa [#allocation5], 0  ;;  %s122_s12 = smov [#allocation3]   ;;  %s74_s16 = scalar_lea.hbm %s174_s0, 128 }
   0x2   :  { %s17_s13 = sshll.u32 %s122_s12, 4  ;;  %p75_p0 = scmp.ne.s32.totalorder %s174_s0, %s74_s16  ;;  %s18_s13 = int_to_ptr.vmem [resolvable:$true] %s17_s13 }
   0x3   :  { %p78_p1 = scmp.lt.u32.totalorder %s74_s16, %s174_s0 }
   0x5   :  { %p80_p2 = pnand %p78_p1, %p75_p0 }
   0x7   :  { %83 = shalt.err (!%p80_p2)
}
   0x8   :  { %s84_s21 = scalar_lea.vmem %s18_s13, 128  ;;  %p89_p4 = scmp.lt.s32.totalorder %s18_s13, %s18_s13 }
   0x9   :  { %p85_p3 = scmp.ne.s32.totalorder %s18_s13, %s84_s21  ;;  %p90_p5 = scmp.lt.s32.totalorder %s84_s21, %s84_s21 }
   0xb   :  { %p91_p6 = por %p90_p5, %p89_p4 }
   0xd   :  { %p92_p7 = pnand %p91_p6, %p85_p3 }
   0xf   :  { %95 = shalt.err (!%p92_p7)
}
  0x10   :  { %20 = dma.hbm_to_vmem [thread:$0]  %s174_s0, 128, %s18_s13, [#allocation4]  }
  0x11   :  { %118 = dma.done.wait [#allocation4], 128  }
  0x12   :  { %119 = vsyncadd [#allocation4], 4294967168  ;;  %v28_v0 = vld [vmem:[#allocation3] sm:$0xff]  ;;  %vm38_vm0 = vcmask 261120   ;;  %v47_v4 = vlaneseq  ;;  %v42_v5 = vstv %s176_s2  ;;  %s123_s0 = smov [#allocation6]   ;;  %vm54_vm1 = vcmask 57344  }
  0x13   :  { %v71_v1 = vld [vmem:[%s175_s1] ss:$0 sm:$0xff]  ;;  %s62_s28 = sshll.u32 %s123_s0, 4  ;;  %s63_s28 = int_to_ptr.vmem [resolvable:$true] %s62_s28 }
  0x14   :  { %v37_v2 = vmul.f32 %v71_v1, %v28_v0  ;;  %v48_v6 = vand.u32 127, %v47_v4  ;;  %v50_v7 = vshrl.u32 %v47_v4, 7  ;;  %s96_s1 = scalar_lea.vmem %s63_s28, 16  ;;  %s100_s29 = scalar_lea.vmem %s63_s28, 32 }
  0x15   :  { %p97_p8 = scmp.ne.s32.totalorder %s63_s28, %s96_s1  ;;  %p101_p9 = scmp.lt.s32.totalorder %s63_s28, %s63_s28 }
  0x16   :  { %v39_v3 = vsel %vm38_vm0, %v37_v2, 0.0  ;;  %v51_v11 = vsub.s32 %v48_v6, %v50_v7  ;;  %p102_p10 = scmp.lt.s32.totalorder %s100_s29, %s96_s1 }
  0x17   :  { %40 = vadd.xlane.f32.xlu0 %v39_v3 }
  0x18   :  { %p103_p11 = por %p102_p10, %p101_p9 }
  0x1a   :  { %p104_p12 = pnand %p103_p11, %p97_p8 }
  0xa4   :  { %v41_v8 = vpop.xlane.xlu0 %40 }
  0xa5   :  { %v43_v9 = vadd.f32 %v42_v5, %v41_v8 }
  0xa7   :  { %v44_v10 = vmax.f32 %v43_v9, 0.0 }
  0xa9   :  { %v45_v12 = vadd.f32 1e-12, %v44_v10 }
  0xab   :  { %v52_v13 = vrot.slane %v45_v12, %v51_v11 }
  0xad   :  { %55 = vst.msk [vmem:[#allocation6] sm:$0x1] %vm54_vm1, %v52_v13 }
  0xae   :  { %107 = shalt.err (!%p104_p12)
}
  0xaf   :  { %s108_s4 = scalar_lea.hbm %s177_s3, 16 }
  0xb0   :  { %p109_p13 = scmp.ne.s32.totalorder %s177_s3, %s108_s4  ;;  %p112_p0 = scmp.lt.u32.totalorder %s108_s4, %s177_s3 }
  0xb2   :  { %p114_p1 = pnand %p112_p0, %p109_p13 }
  0xb4   :  { %117 = shalt.err (!%p114_p1)
}
  0xb5   :  { %65 = dma.vmem_to_hbm [thread:$0]  %s63_s28, 16, %s177_s3, [#allocation5]  }
  0xb6   :  { %120 = dma.done.wait [#allocation5], 16  }
  0xb7   :  { %121 = vsyncadd [#allocation5], 4294967280 }
  0xb8   :  { %69 = vsyncpa [#allocation4], 1 }
  0xb9   :  { %70 = vsyncpa [#allocation5], 1 }

</bundles_post_ra>
